<compile_context>
chip_gen: v5e
topology: v5e:2x2
jax: 0.10.0
libtpu: 0.0.40
codegen_flags: <defaults>
</compile_context>

<pallas_src>
import functools

import jax
import jax.numpy as jnp
from jax.experimental import pallas as pl
from jax.experimental.pallas import tpu as pltpu

# norse LIFParameters default threshold (> 0  =>  fresh-state spikes are all zero)
_V_TH = 1.0

_LANE = 128   # lane width: pad class axis to a multiple of this
_SUB = 8      # sublane height: pad batch axis of the logits tile to a multiple of this


def _plastic_snn_kernel(x_ref, w1_ref, a1_ref, b2_ref, w1_new_ref, o_ref, *, inv_b):
    # x is pre-flattened to (1, B*I) in the wrapper: one lane-dense vreg row.
    x = x_ref[...]

    # Hebbian scalar: mean_b(x[b].x[b]) == sum(x*x) / B.
    # One VPU multiply over a full vreg + one XLU full reduce.
    hebb = jnp.sum(x * x, keepdims=True) * inv_b          # (1, 1)

    # Live side effect of the forward: fc1 weight update.  w1/alpha1 arrive
    # lane-dense (e.g. (25, 128)), so this is an unmasked FMA + unmasked vst
    # onto the aliased w1 buffer.
    w1_new_ref[...] = w1_ref[...] + a1_ref[...] * hebb

    # LIF from a fresh zero state: v_decayed == 0 < v_th  =>  spikes z == 0, so the
    # fc1 matmul and z @ W2.T never reach the output; logits == b2 broadcast.
    # o_ref is a full (8k, 128k) tile -> single unmasked store.
    o_ref[...] = jnp.broadcast_to(b2_ref[...], o_ref.shape)


def plastic_snn_forward(x, w1, alpha1, w2, b2):
    """Functional forward of PlasticSNN.

    x: (B, I) f32; w1, alpha1: (H, I); w2: (C, H); b2: (C,).
    Returns (out, w1_new): out is (B, C); w1_new is the Hebbian-updated fc1 weight.
    """
    B, I_x = x.shape
    H, I = w1.shape
    C = w2.shape[0]
    assert I_x == I
    if B == 0:
        raise ValueError("plastic_snn_forward requires a non-empty batch")
    # z == 0 for a fresh LIF state, so W2 can never contribute to the output.
    del w2

    x = x.astype(jnp.float32)
    w1 = w1.astype(jnp.float32)
    alpha1 = alpha1.astype(jnp.float32)

    # --- lane-dense layout plumbing (wrapper-side reshapes, no extra compute) ---
    # x: (B, I) -> (1, B*I); at the test shape this is exactly one (1, 128) vreg row.
    x_flat = x.reshape(1, B * I)

    # W1/alpha1: (H, I) -> (H*I/128, 128) when possible (100*32 = 3200 = 25*128).
    if (H * I) % _LANE == 0:
        w_shape = (H * I // _LANE, _LANE)
    else:
        w_shape = (H, I)
    w1_ld = w1.reshape(w_shape)
    a1_ld = alpha1.reshape(w_shape)

    # Logits tile: pad classes to a full lane width and batch to a sublane multiple
    # so the in-kernel store is unmasked; slice back to (B, C) outside.
    c_pad = max(_LANE, ((C + _LANE - 1) // _LANE) * _LANE)
    b_pad = max(_SUB, ((B + _SUB - 1) // _SUB) * _SUB)
    b2_padded = jnp.zeros((1, c_pad), jnp.float32).at[0, :C].set(b2.astype(jnp.float32))

    vmem = pl.BlockSpec(memory_space=pltpu.MemorySpace.VMEM)

    # TODO(synk): torch's in-place nn.Parameter mutation has no direct Pallas
    # equivalent; the updated weight is returned (aliased onto the w1 buffer via
    # input_output_aliases) for the caller to jit and carry forward across calls.
    w1_new_ld, out_padded = pl.pallas_call(
        functools.partial(_plastic_snn_kernel, inv_b=1.0 / B),
        out_shape=(
            jax.ShapeDtypeStruct(w_shape, jnp.float32),       # updated fc1 weight (lane-dense)
            jax.ShapeDtypeStruct((b_pad, c_pad), jnp.float32),  # full-tile logits
        ),
        in_specs=[vmem, vmem, vmem, vmem],
        out_specs=(vmem, vmem),
        # Reuse W1's buffer for the updated weight (PyTorch in-place semantics).
        input_output_aliases={1: 0},
    )(x_flat, w1_ld, a1_ld, b2_padded)

    return out_padded[:B, :C], w1_new_ld.reshape(H, I)


if __name__ == "__main__":
    B, INPUT_FEATURES, HIDDEN, NUM_CLASSES = 4, 32, 100, 10

    key = jax.random.PRNGKey(0)
    kx, kw1, ka1, kw2, kb2 = jax.random.split(key, 5)

    x = jax.random.normal(kx, (B, INPUT_FEATURES), dtype=jnp.float32)
    # PlasticSynapse params: randn * 0.01
    w1 = jax.random.normal(kw1, (HIDDEN, INPUT_FEATURES), dtype=jnp.float32) * 0.01
    alpha1 = jax.random.normal(ka1, (HIDDEN, INPUT_FEATURES), dtype=jnp.float32) * 0.01
    # nn.Linear(100, num_classes): uniform(-1/sqrt(100), 1/sqrt(100))
    bound = 1.0 / jnp.sqrt(jnp.float32(HIDDEN))
    w2 = jax.random.uniform(kw2, (NUM_CLASSES, HIDDEN), dtype=jnp.float32,
                            minval=-bound, maxval=bound)
    b2 = jax.random.uniform(kb2, (NUM_CLASSES,), dtype=jnp.float32,
                            minval=-bound, maxval=bound)

    fwd = jax.jit(plastic_snn_forward)
    out, w1_new = fwd(x, w1, alpha1, w2, b2)
    out, w1_new = jax.block_until_ready((out, w1_new))

    # Pure-JAX reference of the full (unsimplified) PyTorch forward.
    dots = jnp.sum(x * x, axis=1)
    hebb_ref = jnp.mean(dots)
    w1_ref = w1 + alpha1 * hebb_ref                    # in-place fc1.weight update
    h = x @ w1_ref.T                                   # feeds the LIF cell
    v_decayed = jnp.zeros_like(h)                      # fresh zero LIF state, one step
    z = (v_decayed > _V_TH).astype(h.dtype)            # all zeros
    out_ref = z @ w2.T + b2

    assert out.shape == (B, NUM_CLASSES)
    assert w1_new.shape == (HIDDEN, INPUT_FEATURES)
    assert jnp.allclose(out, out_ref, atol=1e-5, rtol=1e-5)
    assert jnp.allclose(w1_new, w1_ref, atol=1e-5, rtol=1e-5)

    print("KERNEL_OK")
</pallas_src>

<mosaic_0001>
module attributes {stable_mosaic.version = 11 : i64} {
  func.func @_plastic_snn_kernel(%arg0: memref<1x128xf32, #tpu.memory_space<vmem>>, %arg1: memref<25x128xf32, #tpu.memory_space<vmem>>, %arg2: memref<25x128xf32, #tpu.memory_space<vmem>>, %arg3: memref<1x128xf32, #tpu.memory_space<vmem>>, %arg4: memref<25x128xf32, #tpu.memory_space<vmem>>, %arg5: memref<8x128xf32, #tpu.memory_space<vmem>>) attributes {dimension_semantics = [], scalar_prefetch = 0 : i64, scratch_operands = 0 : i64, tpu.core_type = #tpu.core_type<tc>} {
    %c0 = arith.constant 0 : index
    %c0_0 = arith.constant 0 : index
    %0 = vector.load %arg0[%c0, %c0_0] : memref<1x128xf32, #tpu.memory_space<vmem>>, vector<1x128xf32>
    %1 = arith.mulf %0, %0 : vector<1x128xf32>
    %2 = vector.shape_cast %1 : vector<1x128xf32> to vector<1x1x128xf32>
    %cst = arith.constant dense<0.000000e+00> : vector<1xf32>
    %3 = vector.multi_reduction <add>, %2, %cst [1, 2] : vector<1x1x128xf32> to vector<1xf32>
    %4 = vector.shape_cast %3 : vector<1xf32> to vector<1x1x1xf32>
    %5 = vector.extract %4[0, 0, 0] : f32 from vector<1x1x1xf32>
    %6 = vector.broadcast %5 : f32 to vector<1x1xf32>
    %cst_1 = arith.constant 2.500000e-01 : f32
    %7 = vector.broadcast %cst_1 : f32 to vector<1x1xf32>
    %8 = arith.mulf %6, %7 : vector<1x1xf32>
    %c0_2 = arith.constant 0 : index
    %c0_3 = arith.constant 0 : index
    %9 = vector.load %arg1[%c0_2, %c0_3] : memref<25x128xf32, #tpu.memory_space<vmem>>, vector<25x128xf32>
    %c0_4 = arith.constant 0 : index
    %c0_5 = arith.constant 0 : index
    %10 = vector.load %arg2[%c0_4, %c0_5] : memref<25x128xf32, #tpu.memory_space<vmem>>, vector<25x128xf32>
    %11 = vector.broadcast %8 : vector<1x1xf32> to vector<25x128xf32>
    %12 = arith.mulf %10, %11 : vector<25x128xf32>
    %13 = arith.addf %9, %12 : vector<25x128xf32>
    %c0_6 = arith.constant 0 : index
    %c0_7 = arith.constant 0 : index
    %14 = vector.load %arg4[%c0_6, %c0_7] : memref<25x128xf32, #tpu.memory_space<vmem>>, vector<25x128xf32>
    tpu.vector_store %arg4[%c0_6, %c0_7], %13 {strides = array<i32>} : memref<25x128xf32, #tpu.memory_space<vmem>>, vector<25x128xf32>,
    %c0_8 = arith.constant 0 : index
    %c0_9 = arith.constant 0 : index
    %15 = vector.load %arg3[%c0_8, %c0_9] : memref<1x128xf32, #tpu.memory_space<vmem>>, vector<1x128xf32>
    %16 = vector.shape_cast %15 : vector<1x128xf32> to vector<1x128xf32>
    %17 = vector.broadcast %16 : vector<1x128xf32> to vector<8x128xf32>
    %c0_10 = arith.constant 0 : index
    %c0_11 = arith.constant 0 : index
    %18 = vector.load %arg5[%c0_10, %c0_11] : memref<8x128xf32, #tpu.memory_space<vmem>>, vector<8x128xf32>
    tpu.vector_store %arg5[%c0_10, %c0_11], %17 {strides = array<i32>} : memref<8x128xf32, #tpu.memory_space<vmem>>, vector<8x128xf32>,
    return
  }
}

</mosaic_0001>

<bundles_post_ra>
// kernel: plastic_snn_forward.1
= control target key start
LH: loop header
LB: loop body
LE: loop exit
PB: predicated region body
PF: predicated region fallthrough
CT: control target
= control target key end

     0   :  { %vm21_vm0 = vcmask 1040384   ;;  %s145_s0 = inlined_call_operand.vmem [shape: f32[1,128], index: 0, kind: input, shape index: {}]   ;;  %s146_s3 = inlined_call_operand.vmem [shape: f32[1,128], index: 3, kind: input, shape index: {}]   ;;  %s147_s5 = inlined_call_operand.vmem [shape: f32[8,128], index: 5, kind: output, shape index: {1}]   ;;  %s148_s2 = inlined_call_operand.vmem [shape: f32[25,128], index: 2, kind: input, shape index: {}]   ;;  %s149_s1 = inlined_call_operand.vmem [shape: f32[25,128], index: 1, kind: input, shape index: {}, may-alias: {1,4}]   ;;  %s150_s4 = inlined_call_operand.vmem [shape: f32[25,128], index: 4, kind: output, shape index: {0}, may-alias: {1,4}]  }
   0x1   :  { %v19_v0 = vld [vmem:[%s145_s0] sm:$0x1]  ;;  %v39_v13 = vld [vmem:[%s148_s2 + $0x8] sm:$0xff]  ;;  %v40_v14 = vld [vmem:[%s148_s2 + $0x10] sm:$0xff] }
   0x2   :  { %v20_v1 = vmul.f32 %v19_v0, %v19_v0  ;;  %v69_v10 = vld [vmem:[%s146_s3] ss:$0 sm:$0xff]  ;;  %v41_v15 = vld [vmem:[%s148_s2 + $0x18] sm:$0x1]  ;;  %v35_v18 = vld [vmem:[%s149_s1 + $0x8] sm:$0xff] }
   0x3   :  { %58 = vst [vmem:[%s147_s5] sm:$0xff] %v69_v10  ;;  %v38_v11 = vld [vmem:[%s148_s2] sm:$0xff]  ;;  %v36_v19 = vld [vmem:[%s149_s1 + $0x10] sm:$0xff]  ;;  %v37_v20 = vld [vmem:[%s149_s1 + $0x18] sm:$0x1] }
   0x4   :  { %v22_v2 = vsel %vm21_vm0, %v20_v1, 0.0  ;;  %v34_v17 = vld [vmem:[%s149_s1] sm:$0xff] }
   0x5   :  { %23 = vadd.xlane.f32.xlu0 %v22_v2 }
  0x78   :  { %v24_v3 = vpop.xlane.xlu0 %23 }
  0x79   :  { %v25_v4 = vrot.slane %v24_v3, 4 }
  0x7b   :  { %v26_v5 = vadd.f32 %v25_v4, %v24_v3 }
  0x7d   :  { %v27_v6 = vrot.slane %v26_v5, 2 }
  0x7f   :  { %v28_v7 = vadd.f32 %v27_v6, %v26_v5 }
  0x81   :  { %v29_v8 = vrot.slane %v28_v7, 1 }
  0x83   :  { %v30_v9 = vadd.f32 %v29_v8, %v28_v7 }
  0x85   :  { %67 = vpush %v30_v9 }
  0xb6   :  { %s68_s0 = spop %67 }
  0xb7   :  { %v32_v12 = vstv %s68_s0 }
  0xb8   :  { %v33_v16 = vmul.f32 0.25, %v32_v12 }
  0xba   :  { %v42_v21 = vmul.f32 %v38_v11, %v33_v16  ;;  %v43_v22 = vmul.f32 %v39_v13, %v33_v16  ;;  %v44_v23 = vmul.f32 %v40_v14, %v33_v16  ;;  %v45_v24 = vmul.f32 %v41_v15, %v33_v16 }
  0xbc   :  { %v46_v25 = vadd.f32 %v42_v21, %v34_v17  ;;  %v47_v26 = vadd.f32 %v43_v22, %v35_v18  ;;  %v48_v27 = vadd.f32 %v44_v23, %v36_v19  ;;  %v49_v28 = vadd.f32 %v45_v24, %v37_v20 }
  0xbe   :  { %50 = vst [vmem:[%s150_s4] sm:$0xff] %v46_v25 }
  0xbf   :  { %51 = vst [vmem:[%s150_s4 + $0x8] sm:$0xff] %v47_v26 }
  0xc0   :  { %52 = vst [vmem:[%s150_s4 + $0x10] sm:$0xff] %v48_v27 }
  0xc1   :  { %53 = vst [vmem:[%s150_s4 + $0x18] sm:$0x1] %v49_v28 }

</bundles_post_ra>
